<compile_context>
chip_gen: v7x
topology: tpu7x:2x2x1
jax: 0.10.0
libtpu: 0.0.40
codegen_flags: <defaults>
</compile_context>

<pallas_src>
import jax
import jax.numpy as jnp
from jax.experimental import pallas as pl
from jax.experimental.pallas import tpu as pltpu


def _round_up(n, m):
    return ((n + m - 1) // m) * m


def _make_kernel(F, F2, C):
    """Kernel factory closing over the (static) layer sizes."""

    def kernel(xt_ref, p_ref, o_ref):
        # Lane-dense layout: batch lives on the lane (last) axis.
        xt = xt_ref[...]                                          # (F, TB)

        # Single packed params block (VMEM-resident): static sub-window loads.
        w1t = p_ref[0, :F2, :F]                                   # (2F, F)
        b1t = p_ref[1, :F2, :1]                                   # (2F, 1)
        w2t = p_ref[2, :F, :F2]                                   # (F, 2F)
        b2t = p_ref[3, :F, :1]                                    # (F, 1)
        w3t = p_ref[4, :C, :F]                                    # (C, F)
        b3t = p_ref[5, :C, :1]                                    # (C, 1)

        # Layer 1: Linear + Sigmoid      (2F, F) @ (F, TB) -> (2F, TB)
        # (If profiling ever shows the sigmoid lowering to a VALU divide,
        #  rewrite as pl.reciprocal(1 + exp(-x), approx=True) to stay on EUP.)
        h1 = jax.nn.sigmoid(
            jnp.dot(w1t, xt, preferred_element_type=jnp.float32) + b1t)

        # Layer 2: Linear + Sigmoid      (F, 2F) @ (2F, TB) -> (F, TB)
        h2 = jax.nn.sigmoid(
            jnp.dot(w2t, h1, preferred_element_type=jnp.float32) + b2t)

        # Layer 3: Linear                (C, F) @ (F, TB) -> (C, TB)
        logits = jnp.dot(w3t, h2, preferred_element_type=jnp.float32) + b3t

        # Numerically stable softmax over the class axis (axis 0 here).
        m = jnp.max(logits, axis=0, keepdims=True)                # (1, TB)
        e = jnp.exp(logits - m)                                   # (C, TB)
        denom = jnp.sum(e, axis=0, keepdims=True)                 # (1, TB)
        o_ref[...] = e * pl.reciprocal(denom, approx=True)        # EUP divide

    return kernel


def _pack_params(w1, b1, w2, b2, w3, b3):
    """Pack all 6 (tiny) params into one padded (6, R, Cp) f32 array."""
    F, F2 = w1.shape
    C = w3.shape[1]
    R = max(F2, F, C)
    Cp = max(F2, F, 1)

    def put(a):
        a = a.astype(jnp.float32)
        r, c = a.shape
        return jnp.pad(a, ((0, R - r), (0, Cp - c)))

    mats = [put(w1.T), put(b1.reshape(F2, 1)),
            put(w2.T), put(b2.reshape(F, 1)),
            put(w3.T), put(b3.reshape(C, 1))]
    return jnp.stack(mats, axis=0)                                # (6, R, Cp)


def _mlp_softmax_pallas(xt, params, F, F2, C, block_batch):
    """Core pallas call. xt: (F, B) feature-major f32. Returns (C, B)."""
    _, B = xt.shape
    # Batch tile: multiple of 128 (lane width); default 8192, capped by batch.
    TB = min(_round_up(block_batch, 128), _round_up(max(B, 1), 128))
    B_pad = _round_up(B, TB)
    if B_pad != B:
        # Padded columns are zeros -> finite, harmless, sliced off below.
        xt = jnp.pad(xt, ((0, 0), (0, B_pad - B)))
    num_tiles = B_pad // TB

    out = pl.pallas_call(
        _make_kernel(F, F2, C),
        out_shape=jax.ShapeDtypeStruct((C, B_pad), jnp.float32),
        grid=(num_tiles,),
        in_specs=[
            pl.BlockSpec((F, TB), lambda i: (0, i)),              # x tile
            # Packed params: full-array block, constant index_map -> one DMA,
            # VMEM-resident across all grid steps.
            pl.BlockSpec(params.shape, lambda i: (0, 0, 0)),
        ],
        out_specs=pl.BlockSpec((C, TB), lambda i: (0, i)),
        # On v7x, switching this axis to pltpu.CORE_PARALLEL (num_tiles >= 2)
        # shards the batch grid across both TensorCores; kept as "parallel"
        # here for portability to single-core v5e/v6e.
        compiler_params=pltpu.CompilerParams(
            dimension_semantics=("parallel",)),
    )(xt, params)

    return out[:, :B]


def softmax_reg_mlp_feature_major(xt, w1, b1, w2, b2, w3, b3, *,
                                  block_batch=8192):
    """Feature-major fast path (no wrapper transposes / extra HBM passes).

    xt: (F, B) f32; weights stored as (in, out), biases as (1, out).
    Returns (C, B) f32 softmax probabilities.
    """
    F, F2 = w1.shape
    C = w3.shape[1]
    params = _pack_params(w1, b1, w2, b2, w3, b3)
    return _mlp_softmax_pallas(xt.astype(jnp.float32), params, F, F2, C,
                               block_batch)


def softmax_reg_mlp(x, w1, b1, w2, b2, w3, b3, *, block_batch=8192):
    """PyTorch-layout entry point: x (B, F) -> (B, C) probabilities.

    For large-batch pipelines prefer softmax_reg_mlp_feature_major and keep
    activations feature-major upstream (avoids the two transposes below).
    """
    out_t = softmax_reg_mlp_feature_major(
        x.astype(jnp.float32).T, w1, b1, w2, b2, w3, b3,
        block_batch=block_batch)
    return out_t.T


def _reference(x, w1, b1, w2, b2, w3, b3):
    h1 = jax.nn.sigmoid(x @ w1 + b1)
    h2 = jax.nn.sigmoid(h1 @ w2 + b2)
    logits = h2 @ w3 + b3
    return jax.nn.softmax(logits, axis=-1)


def init_params(key, n_features, n_classes):
    """Deterministic synthetic init (uniform, roughly matching nn.Linear scale)."""
    ks = jax.random.split(key, 6)
    dims = [(n_features, 2 * n_features),
            (2 * n_features, n_features),
            (n_features, n_classes)]
    params = []
    for li, (fin, fout) in enumerate(dims):
        bound = 1.0 / jnp.sqrt(jnp.float32(fin))
        w = jax.random.uniform(ks[2 * li], (fin, fout), jnp.float32, -bound, bound)
        b = jax.random.uniform(ks[2 * li + 1], (1, fout), jnp.float32, -bound, bound)
        params += [w, b]
    return params


if __name__ == "__main__":
    # Iris-like sizes: 4 features, 3 classes, small batch of 8.
    batch, n_features, n_classes = 8, 4, 3

    key = jax.random.PRNGKey(0)
    kx, kp, kx2 = jax.random.split(key, 3)
    x = jax.random.normal(kx, (batch, n_features), dtype=jnp.float32)
    w1, b1, w2, b2, w3, b3 = init_params(kp, n_features, n_classes)

    # Case 1: PyTorch-layout wrapper, single tile.
    y = softmax_reg_mlp(x, w1, b1, w2, b2, w3, b3)
    jax.block_until_ready(y)
    assert y.shape == (batch, n_classes)
    assert jnp.allclose(jnp.sum(y, axis=-1), 1.0, atol=5e-3)
    y_ref = _reference(x, w1, b1, w2, b2, w3, b3)
    assert jnp.allclose(y, y_ref, atol=5e-3, rtol=5e-3)

    # Case 2: feature-major fast path, multiple tiles + batch padding.
    batch2 = 300
    x2 = jax.random.normal(kx2, (batch2, n_features), dtype=jnp.float32)
    y2_t = softmax_reg_mlp_feature_major(x2.T, w1, b1, w2, b2, w3, b3,
                                         block_batch=128)
    jax.block_until_ready(y2_t)
    assert y2_t.shape == (n_classes, batch2)
    y2_ref = _reference(x2, w1, b1, w2, b2, w3, b3)
    assert jnp.allclose(y2_t.T, y2_ref, atol=5e-3, rtol=5e-3)

    print("KERNEL_OK")
</pallas_src>

<mosaic_0001>
module attributes {stable_mosaic.version = 11 : i64} {
  func.func @kernel(%arg0: i32, %arg1: memref<4x128xf32, #tpu.memory_space<vmem>>, %arg2: memref<6x8x8xf32, #tpu.memory_space<vmem>>, %arg3: memref<3x128xf32, #tpu.memory_space<vmem>>) attributes {dimension_semantics = [#tpu.dimension_semantics<parallel>], iteration_bounds = array<i64: 1>, scalar_prefetch = 0 : i64, scratch_operands = 0 : i64, tpu.core_type = #tpu.core_type<tc>, window_params = [{transform_indices = @transform_0, window_bounds = array<i64: 4, 128>}, {pipeline_mode = #tpu.pipeline_mode<synchronous>, transform_indices = @transform_1, window_bounds = array<i64: 6, 8, 8>}, {transform_indices = @transform_2, window_bounds = array<i64: 3, 128>}]} {
    %c0 = arith.constant 0 : index
    %c0_0 = arith.constant 0 : index
    %0 = vector.load %arg1[%c0, %c0_0] : memref<4x128xf32, #tpu.memory_space<vmem>>, vector<4x128xf32>
    %c0_1 = arith.constant 0 : index
    %c0_2 = arith.constant 0 : index
    %c0_3 = arith.constant 0 : index
    %1 = vector.load %arg2[%c0_1, %c0_2, %c0_3] : memref<6x8x8xf32, #tpu.memory_space<vmem>>, vector<1x8x4xf32>
    %2 = vector.shape_cast %1 : vector<1x8x4xf32> to vector<8x4xf32>
    %c1 = arith.constant 1 : index
    %c0_4 = arith.constant 0 : index
    %c0_5 = arith.constant 0 : index
    %3 = vector.load %arg2[%c1, %c0_4, %c0_5] : memref<6x8x8xf32, #tpu.memory_space<vmem>>, vector<1x8x1xf32>
    %4 = vector.shape_cast %3 : vector<1x8x1xf32> to vector<8x1xf32>
    %c2 = arith.constant 2 : index
    %c0_6 = arith.constant 0 : index
    %c0_7 = arith.constant 0 : index
    %5 = vector.load %arg2[%c2, %c0_6, %c0_7] : memref<6x8x8xf32, #tpu.memory_space<vmem>>, vector<1x4x8xf32>
    %6 = vector.shape_cast %5 : vector<1x4x8xf32> to vector<4x8xf32>
    %c3 = arith.constant 3 : index
    %c0_8 = arith.constant 0 : index
    %c0_9 = arith.constant 0 : index
    %7 = vector.load %arg2[%c3, %c0_8, %c0_9] : memref<6x8x8xf32, #tpu.memory_space<vmem>>, vector<1x4x1xf32>
    %8 = vector.shape_cast %7 : vector<1x4x1xf32> to vector<4x1xf32>
    %c4 = arith.constant 4 : index
    %c0_10 = arith.constant 0 : index
    %c0_11 = arith.constant 0 : index
    %9 = vector.load %arg2[%c4, %c0_10, %c0_11] : memref<6x8x8xf32, #tpu.memory_space<vmem>>, vector<1x3x4xf32>
    %10 = vector.shape_cast %9 : vector<1x3x4xf32> to vector<3x4xf32>
    %c5 = arith.constant 5 : index
    %c0_12 = arith.constant 0 : index
    %c0_13 = arith.constant 0 : index
    %11 = vector.load %arg2[%c5, %c0_12, %c0_13] : memref<6x8x8xf32, #tpu.memory_space<vmem>>, vector<1x3x1xf32>
    %12 = vector.shape_cast %11 : vector<1x3x1xf32> to vector<3x1xf32>
    %cst = arith.constant dense<0.000000e+00> : vector<8x128xf32>
    %13 = tpu.matmul %2, %0, %cst {dimension_numbers = #tpu.dot_dimension_numbers<[1], [0], [0], [1], [0, 0, 1, 1], [], []>} : vector<8x4xf32>, vector<4x128xf32>, vector<8x128xf32> -> vector<8x128xf32>
    %14 = vector.broadcast %4 : vector<8x1xf32> to vector<8x128xf32>
    %15 = arith.addf %13, %14 : vector<8x128xf32>
    %16 = arith.negf %15 : vector<8x128xf32>
    %17 = math.exp %16 : vector<8x128xf32>
    %cst_14 = arith.constant 1.000000e+00 : f32
    %18 = vector.broadcast %cst_14 : f32 to vector<8x128xf32>
    %19 = arith.addf %18, %17 : vector<8x128xf32>
    %20 = arith.divf %18, %19 : vector<8x128xf32>
    %cst_15 = arith.constant dense<0.000000e+00> : vector<4x128xf32>
    %21 = tpu.matmul %6, %20, %cst_15 {dimension_numbers = #tpu.dot_dimension_numbers<[1], [0], [0], [1], [0, 0, 1, 1], [], []>} : vector<4x8xf32>, vector<8x128xf32>, vector<4x128xf32> -> vector<4x128xf32>
    %22 = vector.broadcast %8 : vector<4x1xf32> to vector<4x128xf32>
    %23 = arith.addf %21, %22 : vector<4x128xf32>
    %24 = arith.negf %23 : vector<4x128xf32>
    %25 = math.exp %24 : vector<4x128xf32>
    %cst_16 = arith.constant 1.000000e+00 : f32
    %26 = vector.broadcast %cst_16 : f32 to vector<4x128xf32>
    %27 = arith.addf %26, %25 : vector<4x128xf32>
    %28 = arith.divf %26, %27 : vector<4x128xf32>
    %cst_17 = arith.constant dense<0.000000e+00> : vector<3x128xf32>
    %29 = tpu.matmul %10, %28, %cst_17 {dimension_numbers = #tpu.dot_dimension_numbers<[1], [0], [0], [1], [0, 0, 1, 1], [], []>} : vector<3x4xf32>, vector<4x128xf32>, vector<3x128xf32> -> vector<3x128xf32>
    %30 = vector.broadcast %12 : vector<3x1xf32> to vector<3x128xf32>
    %31 = arith.addf %29, %30 : vector<3x128xf32>
    %cst_18 = arith.constant dense<0xFF800000> : vector<128xf32>
    %32 = vector.multi_reduction <maximumf>, %31, %cst_18 [0] : vector<3x128xf32> to vector<128xf32>
    %33 = vector.shape_cast %32 : vector<128xf32> to vector<1x128xf32>
    %34 = vector.broadcast %33 : vector<1x128xf32> to vector<3x128xf32>
    %35 = arith.subf %31, %34 : vector<3x128xf32>
    %36 = math.exp %35 : vector<3x128xf32>
    %cst_19 = arith.constant dense<0.000000e+00> : vector<128xf32>
    %37 = vector.multi_reduction <add>, %36, %cst_19 [0] : vector<3x128xf32> to vector<128xf32>
    %38 = vector.shape_cast %37 : vector<128xf32> to vector<1x128xf32>
    %39 = tpu.reciprocal %38 {approx = true} : vector<1x128xf32> -> vector<1x128xf32>
    %40 = vector.broadcast %39 : vector<1x128xf32> to vector<3x128xf32>
    %41 = arith.mulf %36, %40 : vector<3x128xf32>
    %c0_20 = arith.constant 0 : index
    %c0_21 = arith.constant 0 : index
    %42 = vector.load %arg3[%c0_20, %c0_21] : memref<3x128xf32, #tpu.memory_space<vmem>>, vector<3x128xf32>
    tpu.vector_store %arg3[%c0_20, %c0_21], %41 {strides = array<i32>} : memref<3x128xf32, #tpu.memory_space<vmem>>, vector<3x128xf32>,
    return
  }
  func.func @transform_0(%arg0: i32) -> (i32, i32) {
    %c0_i32 = arith.constant 0 : i32
    %c0_i32_0 = arith.constant 0 : i32
    return %c0_i32, %arg0 : i32, i32
  }
  func.func @transform_1(%arg0: i32) -> (i32, i32, i32) {
    %c0_i32 = arith.constant 0 : i32
    %c0_i32_0 = arith.constant 0 : i32
    %c0_i32_1 = arith.constant 0 : i32
    %c0_i32_2 = arith.constant 0 : i32
    return %c0_i32, %c0_i32_0, %c0_i32_1 : i32, i32, i32
  }
  func.func @transform_2(%arg0: i32) -> (i32, i32) {
    %c0_i32 = arith.constant 0 : i32
    %c0_i32_0 = arith.constant 0 : i32
    return %c0_i32, %arg0 : i32, i32
  }
}

</mosaic_0001>

<bundles_post_ra>
// kernel: tpu_custom_call.1
= control target key start
LH: loop header
LB: loop body
LE: loop exit
PB: predicated region body
PF: predicated region fallthrough
CT: control target
= control target key end

     0   :  { %7 = vsyncpa [#allocation3], 0  ;;  %s537_s0 = inlined_call_operand.hbm [shape: f32[4,128], index: 0, kind: input, shape index: {}]   ;;  %s538_s1 = inlined_call_operand.hbm [shape: f32[6,8,8], index: 1, kind: input, shape index: {}]   ;;  %s539_s2 = inlined_call_operand.hbm [shape: f32[3,128], index: 2, kind: output, shape index: {}]  }
   0x1   :  { %8 = vsyncpa [#allocation6], 0 }
   0x2   :  { %9 = vsyncpa [#allocation4], 0  ;;  %s464_s9 = smov [#allocation2]   ;;  %s465_s11 = smov [#allocation5]  }
   0x3   :  { %s16_s10 = sshll.u32 %s464_s9, 4  ;;  %s25_s12 = sshll.u32 %s465_s11, 4  ;;  %s17_s10 = int_to_ptr.vmem [resolvable:$true] %s16_s10  ;;  %s487_s12 = int_to_ptr.vmem [resolvable:$true] %s25_s12 }
   0x4   :  { %s392_s15 = scalar_lea.hbm %s537_s0, 64 }
   0x5   :  { %p393_p0 = scmp.ne.s32.totalorder %s537_s0, %s392_s15  ;;  %p396_p1 = scmp.lt.u32.totalorder %s392_s15, %s537_s0 }
   0x7   :  { %p398_p2 = pnand %p396_p1, %p393_p0 }
   0x9   :  { %401 = shalt.err (!%p398_p2)
}
   0xa   :  { %s402_s20 = scalar_lea.vmem %s17_s10, 64  ;;  %p407_p4 = scmp.lt.s32.totalorder %s17_s10, %s17_s10 }
   0xb   :  { %p403_p3 = scmp.ne.s32.totalorder %s17_s10, %s402_s20  ;;  %p408_p5 = scmp.lt.s32.totalorder %s402_s20, %s402_s20 }
   0xd   :  { %p409_p6 = por %p408_p5, %p407_p4 }
   0xf   :  { %p410_p7 = pnand %p409_p6, %p403_p3 }
  0x11   :  { %413 = shalt.err (!%p410_p7)
}
  0x12   :  { %19 = dma.hbm_to_vmem [thread:$0]  %s537_s0, 64, %s17_s10, [#allocation3]  }
  0x13   :  { %s414_s25 = scalar_lea.hbm %s538_s1, 768 }
  0x14   :  { %p415_p8 = scmp.ne.s32.totalorder %s538_s1, %s414_s25  ;;  %p418_p9 = scmp.lt.u32.totalorder %s414_s25, %s538_s1 }
  0x16   :  { %p420_p10 = pnand %p418_p9, %p415_p8 }
  0x18   :  { %423 = shalt.err (!%p420_p10)
}
  0x19   :  { %s424_s30 = scalar_lea.vmem %s487_s12, 768  ;;  %p429_p12 = scmp.lt.s32.totalorder %s487_s12, %s487_s12 }
  0x1a   :  { %p425_p11 = scmp.ne.s32.totalorder %s487_s12, %s424_s30  ;;  %p430_p13 = scmp.lt.s32.totalorder %s424_s30, %s424_s30 }
  0x1c   :  { %p431_p0 = por %p430_p13, %p429_p12 }
  0x1e   :  { %p432_p1 = pnand %p431_p0, %p425_p11 }
  0x20   :  { %435 = shalt.err (!%p432_p1)
}
  0x21   :  { %s466_s0 = smov 128   ;;  %s467_s3 = smov 8  }
  0x22   :  { %31 = dma.hbm_to_vmem [thread:$0]  %s538_s1, 768, %s487_s12, [#allocation6], %s466_s0, %s466_s0, %s467_s3  }
  0x23   :  { %458 = dma.done.wait [#allocation3], 64  }
  0x24   :  { %459 = vsyncadd [#allocation3], 4294967232 }
  0x25   :  { %460 = dma.done.wait [#allocation6], 768  }
  0x26   :  { %461 = vsyncadd [#allocation6], 4294966528  ;;  %v468_v0 = vmov 0.0   ;;  %vm469_vm0 = vmmov 0   ;;  %v470_v1 = vmov 0   ;;  %vm59_vm1 = vcmask 1043456  }
  0x27   :  { %355 = vmatprep.subr.mxu0 %v468_v0  ;;  %357 = vmatprep.mubr.msk.f32.mxu0 %vm469_vm0, %v468_v0  ;;  %vm55_vm2 = vcmask 31744   ;;  %v38_v2 = vld [vmem:[#allocation2] sm:$0xf]  ;;  %v39_v3 = vld [vmem:[#allocation5] sm:$0xff]  ;;  %v41_v4 = vld [vmem:[#allocation5 + $0x8] sm:$0xff]  ;;  %vm144_vm3 = vcmask 64512  }
  0x28   :  { %378 = vset.pattern.permute.xlu0 %v470_v1  ;;  %360 = vmatprep.subr.mxu1 %v468_v0  ;;  %v45_v5 = vld [vmem:[#allocation5 + $0x18] sm:$0xf]  ;;  %v43_v13 = vld [vmem:[#allocation5 + $0x10] sm:$0xf]  ;;  %v49_v15 = vld [vmem:[#allocation5 + $0x28] sm:$0x7] }
  0x29   :  { %362 = vmatprep.mubr.msk.f32.mxu1 %vm469_vm0, %v468_v0  ;;  %379 = vset.pattern.permute.xlu1 %v470_v1  ;;  %v47_v23 = vld [vmem:[#allocation5 + $0x20] sm:$0x7]  ;;  %vm305_vm4 = vcmask 1042432   ;;  %s471_s1 = smov [#allocation7]  }
  0x2a   :  { %356 = vmatpush3.msk.msra.mxu0 %vm59_vm1, %v38_v2  ;;  %52 = vperm.xlu0 %378, %v41_v4   ;;  %s332_s6 = sshll.u32 %s471_s1, 4  ;;  %s333_s6 = int_to_ptr.vmem [resolvable:$true] %s332_s6 }
  0x2b   :  { %358 = vmatmul.mubr.msk.f32.vlgmr.msra.gmra.mrb[0].mxu0 %vm55_vm2, %v39_v3  ;;  %365 = vmatprep.subr.mxu0 %v468_v0  ;;  %s436_s7 = scalar_lea.vmem %s333_s6, 64  ;;  %p441_p3 = scmp.lt.s32.totalorder %s333_s6, %s333_s6 }
  0x2c   :  { %367 = vmatprep.mubr.msk.f32.mxu0 %vm469_vm0, %v468_v0  ;;  %226 = vperm.xlu1 %379, %v49_v15   ;;  %p437_p2 = scmp.ne.s32.totalorder %s333_s6, %s436_s7  ;;  %p442_p4 = scmp.lt.s32.totalorder %s436_s7, %s436_s7 }
  0x2e   :  { %141 = vperm.xlu0 %378, %v45_v5   ;;  %p443_p5 = por %p442_p4, %p441_p3 }
  0x30   :  { %p444_p6 = pnand %p443_p5, %p437_p2 }
  0xa9   :  { %v53_v6 = vpop.permute.xlu0 %52 }
  0xab   :  { %v227_v25 = vpop.permute.xlu1 %226 }
  0xad   :  { %v142_v16 = vpop.permute.xlu0 %141 }
  0xfe   :  { %v129_v7 = vpop.f32.mrb[0].mxu0 }
  0xff   :  { %v130_v8 = vadd.f32 %v129_v7, %v53_v6  ;;  %v359_v9 = vpop.f32.mrb[1].mxu0 }
 0x101   :  { %v344_v10 = vmul.f32 -1.442695, %v130_v8 }
 0x103   :  { %380 = vpow2.f32 %v344_v10 }
 0x10d   :  { %v381_v11 = vpop.eup %380 }
 0x10e   :  { %v136_v12 = vadd.f32 1.0, %v381_v11 }
 0x110   :  { %382 = vrcp.f32 %v136_v12 }
 0x11a   :  { %v383_v14 = vpop.eup %382 }
 0x11b   :  { %361 = vmatpush3.msra.mxu1 %v383_v14 }
 0x11c   :  { %363 = vmatmul.mubr.msk.f32.vlgmr.msra.gmra.mrb[0].mxu1 %vm144_vm3, %v43_v13 }
 0x1ef   :  { %v214_v17 = vpop.f32.mrb[0].mxu1 }
 0x1f0   :  { %v215_v18 = vadd.f32 %v214_v17, %v142_v16  ;;  %v364_v19 = vpop.f32.mrb[1].mxu1 }
 0x1f2   :  { %v346_v20 = vmul.f32 -1.442695, %v215_v18 }
 0x1f4   :  { %384 = vpow2.f32 %v346_v20 }
 0x1fe   :  { %v385_v21 = vpop.eup %384 }
 0x1ff   :  { %v221_v22 = vadd.f32 1.0, %v385_v21 }
 0x201   :  { %386 = vrcp.f32 %v221_v22 }
 0x20b   :  { %v387_v24 = vpop.eup %386 }
 0x20c   :  { %366 = vmatpush3.msk.msra.mxu0 %vm59_vm1, %v387_v24 }
 0x20d   :  { %368 = vmatmul.mubr.msk.f32.vlgmr.msra.gmra.mrb[2].mxu0 %vm55_vm2, %v47_v23 }
 0x2e0   :  { %v301_v26 = vpop.f32.mrb[2].mxu0 }
 0x2e1   :  { %v302_v27 = vadd.f32 %v301_v26, %v227_v25  ;;  %v369_v28 = vpop.f32.mrb[3].mxu0 }
 0x2e3   :  { %v306_v29 = vsel %vm305_vm4, %v302_v27, -inf }
 0x2e4   :  { %v307_v30 = vrot.slane %v306_v29, 4 }
 0x2e6   :  { %v308_v31 = vmax.f32 %v306_v29, %v307_v30 }
 0x2e8   :  { %v309_v32 = vrot.slane %v308_v31, 2 }
 0x2ea   :  { %v310_v33 = vmax.f32 %v308_v31, %v309_v32 }
 0x2ec   :  { %v311_v34 = vrot.slane %v310_v33, 1 }
 0x2ee   :  { %v312_v35 = vmax.f32 %v310_v33, %v311_v34 }
 0x2f0   :  { %v313_v36 = vsub.f32 %v302_v27, %v312_v35 }
 0x2f2   :  { %v314_v37 = vmul.f32 1.442695, %v313_v36 }
 0x2f4   :  { %388 = vpow2.f32 %v314_v37 }
 0x2fe   :  { %v389_v38 = vpop.eup %388 }
 0x2ff   :  { %v316_v39 = vsel %vm305_vm4, %v389_v38, 0.0 }
 0x300   :  { %v317_v40 = vrot.slane %v316_v39, 4 }
 0x302   :  { %v318_v41 = vadd.f32 %v317_v40, %v316_v39 }
 0x304   :  { %v319_v42 = vrot.slane %v318_v41, 2 }
 0x306   :  { %v320_v43 = vadd.f32 %v319_v42, %v318_v41 }
 0x308   :  { %v321_v44 = vrot.slane %v320_v43, 1 }
 0x30a   :  { %v322_v45 = vadd.f32 %v321_v44, %v320_v43 }
 0x30c   :  { %390 = vrcp.f32 %v322_v45 }
 0x316   :  { %v391_v46 = vpop.eup %390 }
 0x317   :  { %v324_v47 = vmul.f32 %v391_v46, %v389_v38 }
 0x319   :  { %325 = vst [vmem:[#allocation7] sm:$0x7] %v324_v47 }
 0x31a   :  { %447 = shalt.err (!%p444_p6)
}
 0x31b   :  { %s448_s10 = scalar_lea.hbm %s539_s2, 64 }
 0x31c   :  { %p449_p7 = scmp.ne.s32.totalorder %s539_s2, %s448_s10  ;;  %p452_p8 = scmp.lt.u32.totalorder %s448_s10, %s539_s2 }
 0x31e   :  { %p454_p9 = pnand %p452_p8, %p449_p7 }
 0x320   :  { %457 = shalt.err (!%p454_p9)
}
 0x321   :  { %335 = dma.vmem_to_hbm [thread:$0]  %s333_s6, 64, %s539_s2, [#allocation4]  }
 0x322   :  { %462 = dma.done.wait [#allocation4], 64  }
 0x323   :  { %463 = vsyncadd [#allocation4], 4294967232 }
 0x324   :  { %339 = vsyncpa [#allocation3], 1 }
 0x325   :  { %340 = vsyncpa [#allocation6], 1 }
 0x326   :  { %341 = vsyncpa [#allocation4], 1 }

</bundles_post_ra>
